<compile_context>
chip_gen: v5e
topology: v5e:2x2
jax: 0.10.0
libtpu: 0.0.40
codegen_flags: <defaults>
</compile_context>

<pallas_src>
from functools import partial

import jax
import jax.numpy as jnp
import numpy as np
from jax.experimental import pallas as pl
from jax.experimental.pallas import tpu as pltpu

_CHUNK = 512  # rows per in-kernel compute sub-chunk


def _round_up(x, m):
    return (x + m - 1) // m * m


def _static_pow(x, gamma):
    """x ** gamma as an unrolled multiply chain when gamma is a non-negative integer."""
    g = float(gamma)
    if g >= 0.0 and g == int(g):
        e = int(g)
        if e == 0:
            return jnp.ones_like(x)
        acc, base = None, x
        while e > 0:
            if e & 1:
                acc = base if acc is None else acc * base
            e >>= 1
            if e:
                base = base * base
        return acc
    return x ** g  # non-integer gamma: base is already clamped >= 0 by the caller


def _focal_loss_kernel(logits_ref, targets_ref, out_ref, *,
                       alpha, gamma, n_rows, tile_n, chunk_n):
    i = pl.program_id(0)
    c = logits_ref.shape[1]
    n_chunks = tile_n // chunk_n

    # (1, C) column iota -- broadcast against (CHUNK, 1) targets inside the
    # compare, so no (TN, C) int32 temporary is materialized.
    col = jax.lax.broadcasted_iota(jnp.int32, (1, c), 1)

    def body(ci, acc):
        r0 = pl.multiple_of(ci * chunk_n, 8)
        # Cast AFTER the load so bf16 inputs only move half the HBM bytes.
        x = logits_ref[pl.ds(r0, chunk_n), :].astype(jnp.float32)   # (CHUNK, C)
        t = targets_ref[pl.ds(r0, chunk_n), :]                      # (CHUNK, 1) int32

        # Numerically-stable log-softmax pieces.
        m = jnp.max(x, axis=-1, keepdims=True)                      # (CHUNK, 1)
        sx = x - m                                                  # (CHUNK, C)
        lse = jnp.log(jnp.sum(jnp.exp(sx), axis=-1, keepdims=True))  # (CHUNK, 1)

        # Gather the target logit via a broadcast one-hot compare.
        tgt = jnp.sum(jnp.where(col == t, sx, 0.0), axis=-1, keepdims=True)

        # Per-sample cross entropy and focal loss.
        ce = jnp.maximum(lse - tgt, 0.0)    # clamp: fp rounding can give -ulp
        pt = jnp.exp(-ce)
        w = jnp.maximum(1.0 - pt, 0.0)
        focal = alpha * _static_pow(w, gamma) * ce                  # (CHUNK, 1)

        # Mask padded tail rows of the last (ragged) tile out of the sum.
        row = jax.lax.broadcasted_iota(jnp.int32, (chunk_n, 1), 0) + (i * tile_n + r0)
        focal = jnp.where(row < n_rows, focal, 0.0)
        return acc + jnp.sum(focal)

    partial_sum = jax.lax.fori_loop(0, n_chunks, body, jnp.zeros((), jnp.float32))

    # One partial sum per tile, written into its own lane-dense (8, 128) block.
    sub = jax.lax.broadcasted_iota(jnp.int32, (8, 128), 0)
    lane = jax.lax.broadcasted_iota(jnp.int32, (8, 128), 1)
    out_ref[...] = jnp.where((sub == 0) & (lane == 0), partial_sum, 0.0)


def _vmem_budgets():
    """(physical_vmem_bytes, usable_budget_bytes, per-step payload target)."""
    phys = 64 * 1024 * 1024  # conservative default (v7x-class per-TensorCore)
    try:
        info = pltpu.get_tpu_info()
        phys = int(getattr(info, "vmem_capacity_bytes", phys)) or phys
    except Exception:
        pass
    if phys <= 64 * 1024 * 1024:
        # v7x-class: 64 MiB VMEM per TensorCore, 3.2 TB/s HBM -> bigger payload target.
        return phys, 40 * 1024 * 1024, 6 * 1024 * 1024
    # v5e / v6e: 128 MiB VMEM.
    return phys, 64 * 1024 * 1024, 4 * 1024 * 1024


def _choose_tile_n(n, c, itemsize):
    phys, budget, payload_target = _vmem_budgets()
    pad_c = _round_up(c, 128)
    # Per-row VMEM bytes of the two double-buffered input streams as they
    # actually sit in VMEM (lane-padded): logits (TN,C)->(TN,padC),
    # targets (TN,1)->(TN,128) int32.
    row_buf_bytes = pad_c * itemsize + 128 * 4
    # Allowance for in-kernel f32 temporaries (sx, exp(sx), one-hot mask, ...).
    temp_bytes = _CHUNK * pad_c * 4 * 8
    avail = budget - temp_bytes - (2 << 20)
    tn_vmem = max(8, avail // (2 * row_buf_bytes))
    # Size the tile by *real HBM payload* per grid step, not by row count.
    tn_payload = max(8, payload_target // max(1, c * itemsize))
    tn = int(min(tn_vmem, tn_payload, _round_up(n, 8)))
    tn = max(8, (tn // 8) * 8)
    if tn >= _CHUNK:
        tn = (tn // _CHUNK) * _CHUNK  # make the 512-row chunk divide the tile
    return tn


def _chunk_for(tn, target=_CHUNK):
    if tn <= target:
        return tn
    ck = target
    while ck >= 8 and tn % ck != 0:
        ck -= 8
    return max(8, ck)


def focal_loss(logits, targets, alpha=0.5, gamma=5.0, reduction="sum", tile_n=None):
    """Pallas implementation of FocalLoss.forward ('sum' / 'mean' reductions)."""
    n, c = logits.shape
    t2 = targets.astype(jnp.int32).reshape(n, 1)
    itemsize = logits.dtype.itemsize

    tn = _choose_tile_n(n, c, itemsize) if tile_n is None else int(tile_n)
    assert tn % 8 == 0, "row tile must be a multiple of 8 (sublane)"
    chunk_n = _chunk_for(tn)
    num_tiles = int(pl.cdiv(n, tn))

    # VMEM limit from *padded* shapes: double-buffered inputs + chunk-sized
    # temporaries + output blocks + headroom, capped per generation.
    phys, _, _ = _vmem_budgets()
    pad_c = _round_up(c, 128)
    in_bytes = 2 * tn * (pad_c * itemsize + 128 * 4)
    temp_bytes = chunk_n * pad_c * 4 * 8
    out_bytes = 2 * 8 * 128 * 4
    vmem_limit = int(in_bytes + temp_bytes + out_bytes + (4 << 20))
    vmem_limit = int(max(16 << 20, min(vmem_limit, (phys * 3) // 4)))

    partials = pl.pallas_call(
        partial(_focal_loss_kernel, alpha=float(alpha), gamma=float(gamma),
                n_rows=n, tile_n=tn, chunk_n=chunk_n),
        out_shape=jax.ShapeDtypeStruct((num_tiles * 8, 128), jnp.float32),
        grid=(num_tiles,),
        in_specs=[
            pl.BlockSpec((tn, c), lambda i: (i, 0)),   # logits tile (VMEM, pipelined)
            pl.BlockSpec((tn, 1), lambda i: (i, 0)),   # targets tile (VMEM)
        ],
        out_specs=pl.BlockSpec((8, 128), lambda i: (i, 0)),
        compiler_params=pltpu.CompilerParams(
            dimension_semantics=("parallel",),
            vmem_limit_bytes=vmem_limit,
        ),
    )(logits, t2)

    total = jnp.sum(partials)
    if reduction == "sum":
        return total
    if reduction == "mean":
        return total / n
    # TODO(synk): reduction='none' (per-sample vector output) not kerneled; only
    # the module-default 'sum' (and 'mean') reductions are implemented.
    raise NotImplementedError("reduction='none' not implemented in the Pallas kernel")


def _focal_loss_ref(logits, targets, alpha=0.5, gamma=5.0):
    # Pure-JAX reference (matches torch F.cross_entropy + focal weighting, sum).
    logp = jax.nn.log_softmax(logits.astype(jnp.float32), axis=-1)
    ce = -jnp.take_along_axis(logp, targets[:, None].astype(jnp.int32), axis=-1)[:, 0]
    pt = jnp.exp(-ce)
    return jnp.sum(alpha * (1.0 - pt) ** gamma * ce)


if __name__ == "__main__":
    key = jax.random.PRNGKey(0)
    k1, k2, k3, k4, k5, k6 = jax.random.split(key, 6)

    # Test 1: module-sized small example (batch 8, 32 classes) -> single tile.
    N, C = 8, 32
    logits = jax.random.normal(k1, (N, C), dtype=jnp.float32)
    targets = jax.random.randint(k2, (N,), 0, C, dtype=jnp.int32)
    out = jax.block_until_ready(focal_loss(logits, targets))
    ref = jax.block_until_ready(_focal_loss_ref(logits, targets))
    np.testing.assert_allclose(np.asarray(out), np.asarray(ref), rtol=1e-4, atol=1e-4)

    # Test 2: multi-tile grid with a masked ragged tail (N not a multiple of TN).
    N2, C2 = 50, 40
    logits2 = jax.random.normal(k3, (N2, C2), dtype=jnp.float32)
    targets2 = jax.random.randint(k4, (N2,), 0, C2, dtype=jnp.int32)
    out2 = jax.block_until_ready(focal_loss(logits2, targets2, tile_n=16))
    ref2 = jax.block_until_ready(_focal_loss_ref(logits2, targets2))
    np.testing.assert_allclose(np.asarray(out2), np.asarray(ref2), rtol=1e-4, atol=1e-4)

    # Test 3: bf16 logits, auto tiling -> exercises the in-kernel chunk loop
    # (tile 2048 rows, 4 chunks of 512) and the post-load bf16->f32 cast.
    N3, C3 = 2048, 32
    logits3 = jax.random.normal(k5, (N3, C3), dtype=jnp.float32).astype(jnp.bfloat16)
    targets3 = jax.random.randint(k6, (N3,), 0, C3, dtype=jnp.int32)
    out3 = jax.block_until_ready(focal_loss(logits3, targets3))
    ref3 = jax.block_until_ready(_focal_loss_ref(logits3, targets3))
    np.testing.assert_allclose(np.asarray(out3), np.asarray(ref3), rtol=5e-4, atol=5e-4)

    print("KERNEL_OK")
</pallas_src>

<mosaic_0001>
module attributes {stable_mosaic.version = 11 : i64} {
  func.func @_focal_loss_kernel(%arg0: i32, %arg1: memref<8x32xf32, #tpu.memory_space<vmem>>, %arg2: memref<8x1xi32, #tpu.memory_space<vmem>>, %arg3: memref<8x128xf32, #tpu.memory_space<vmem>>) attributes {dimension_semantics = [#tpu.dimension_semantics<parallel>], iteration_bounds = array<i64: 1>, scalar_prefetch = 0 : i64, scratch_operands = 0 : i64, tpu.core_type = #tpu.core_type<tc>, window_params = [{transform_indices = @transform_0, window_bounds = array<i64: 8, 32>}, {transform_indices = @transform_1, window_bounds = array<i64: 8, 1>}, {transform_indices = @transform_2, window_bounds = array<i64: 8, 128>}]} {
    %0 = tpu.iota {dimensions = array<i32: 1>} : vector<1x32xi32>
    %cst = arith.constant 0.000000e+00 : f32
    %c0_i32 = arith.constant 0 : i32
    %c8_i32 = arith.constant 8 : i32
    %1 = arith.muli %c0_i32, %c8_i32 : i32
    %2 = tpu.assume_multiple %1, 8 : i32
    %3 = arith.index_cast %2 : i32 to index
    %c0 = arith.constant 0 : index
    %4 = vector.load %arg1[%3, %c0] : memref<8x32xf32, #tpu.memory_space<vmem>>, vector<8x32xf32>
    %5 = arith.index_cast %2 : i32 to index
    %c0_0 = arith.constant 0 : index
    %6 = vector.load %arg2[%5, %c0_0] : memref<8x1xi32, #tpu.memory_space<vmem>>, vector<8x1xi32>
    %cst_1 = arith.constant dense<0xFF800000> : vector<8xf32>
    %7 = vector.multi_reduction <maximumf>, %4, %cst_1 [1] : vector<8x32xf32> to vector<8xf32>
    %8 = vector.shape_cast %7 : vector<8xf32> to vector<8x1xf32>
    %9 = vector.broadcast %8 : vector<8x1xf32> to vector<8x32xf32>
    %10 = arith.subf %4, %9 : vector<8x32xf32>
    %11 = math.exp %10 : vector<8x32xf32>
    %cst_2 = arith.constant dense<0.000000e+00> : vector<8xf32>
    %12 = vector.multi_reduction <add>, %11, %cst_2 [1] : vector<8x32xf32> to vector<8xf32>
    %13 = vector.shape_cast %12 : vector<8xf32> to vector<8x1xf32>
    %14 = math.log %13 : vector<8x1xf32>
    %15 = vector.broadcast %0 : vector<1x32xi32> to vector<8x32xi32>
    %16 = vector.broadcast %6 : vector<8x1xi32> to vector<8x32xi32>
    %17 = arith.cmpi eq, %15, %16 : vector<8x32xi32>
    %cst_3 = arith.constant 0.000000e+00 : f32
    %18 = vector.broadcast %cst_3 : f32 to vector<8x32xf32>
    %19 = arith.select %17, %10, %18 : vector<8x32xi1>, vector<8x32xf32>
    %cst_4 = arith.constant dense<0.000000e+00> : vector<8xf32>
    %20 = vector.multi_reduction <add>, %19, %cst_4 [1] : vector<8x32xf32> to vector<8xf32>
    %21 = vector.shape_cast %20 : vector<8xf32> to vector<8x1xf32>
    %22 = arith.subf %14, %21 : vector<8x1xf32>
    %cst_5 = arith.constant 0.000000e+00 : f32
    %23 = vector.broadcast %cst_5 : f32 to vector<8x1xf32>
    %24 = arith.maximumf %22, %23 : vector<8x1xf32>
    %cst_6 = arith.constant 0.000000e+00 : f32
    %25 = vector.broadcast %cst_6 : f32 to vector<8x1xf32>
    %26 = arith.subf %25, %24 : vector<8x1xf32>
    %27 = math.exp %26 : vector<8x1xf32>
    %cst_7 = arith.constant 1.000000e+00 : f32
    %28 = vector.broadcast %cst_7 : f32 to vector<8x1xf32>
    %29 = arith.subf %28, %27 : vector<8x1xf32>
    %cst_8 = arith.constant 0.000000e+00 : f32
    %30 = vector.broadcast %cst_8 : f32 to vector<8x1xf32>
    %31 = arith.maximumf %29, %30 : vector<8x1xf32>
    %32 = arith.mulf %31, %31 : vector<8x1xf32>
    %33 = arith.mulf %32, %32 : vector<8x1xf32>
    %34 = arith.mulf %31, %33 : vector<8x1xf32>
    %cst_9 = arith.constant 5.000000e-01 : f32
    %35 = vector.broadcast %cst_9 : f32 to vector<8x1xf32>
    %36 = arith.mulf %35, %34 : vector<8x1xf32>
    %37 = arith.mulf %36, %24 : vector<8x1xf32>
    %38 = tpu.iota {dimensions = array<i32: 0>} : vector<8x1xi32>
    %c8_i32_10 = arith.constant 8 : i32
    %39 = arith.muli %arg0, %c8_i32_10 : i32
    %40 = arith.addi %39, %2 : i32
    %41 = vector.broadcast %40 : i32 to vector<8x1xi32>
    %42 = arith.addi %38, %41 : vector<8x1xi32>
    %c8_i32_11 = arith.constant 8 : i32
    %43 = vector.broadcast %c8_i32_11 : i32 to vector<8x1xi32>
    %44 = arith.cmpi slt, %42, %43 : vector<8x1xi32>
    %cst_12 = arith.constant 0.000000e+00 : f32
    %45 = vector.broadcast %cst_12 : f32 to vector<8x1xf32>
    %46 = arith.select %44, %37, %45 : vector<8x1xi1>, vector<8x1xf32>
    %47 = vector.shape_cast %46 : vector<8x1xf32> to vector<1x8x1xf32>
    %cst_13 = arith.constant dense<0.000000e+00> : vector<1xf32>
    %48 = vector.multi_reduction <add>, %47, %cst_13 [1, 2] : vector<1x8x1xf32> to vector<1xf32>
    %49 = vector.shape_cast %48 : vector<1xf32> to vector<1x1x1xf32>
    %50 = vector.extract %49[0, 0, 0] : f32 from vector<1x1x1xf32>
    %51 = arith.addf %cst, %50 : f32
    %c1_i32 = arith.constant 1 : i32
    %52 = tpu.iota {dimensions = array<i32: 0>} : vector<8x128xi32>
    %53 = tpu.iota {dimensions = array<i32: 1>} : vector<8x128xi32>
    %c0_i32_14 = arith.constant 0 : i32
    %54 = vector.broadcast %c0_i32_14 : i32 to vector<8x128xi32>
    %55 = arith.cmpi eq, %52, %54 : vector<8x128xi32>
    %c0_i32_15 = arith.constant 0 : i32
    %56 = vector.broadcast %c0_i32_15 : i32 to vector<8x128xi32>
    %57 = arith.cmpi eq, %53, %56 : vector<8x128xi32>
    %58 = arith.andi %55, %57 : vector<8x128xi1>
    %cst_16 = arith.constant 0.000000e+00 : f32
    %59 = vector.broadcast %51 : f32 to vector<8x128xf32>
    %60 = vector.broadcast %cst_16 : f32 to vector<8x128xf32>
    %61 = arith.select %58, %59, %60 : vector<8x128xi1>, vector<8x128xf32>
    %c0_17 = arith.constant 0 : index
    %c0_18 = arith.constant 0 : index
    %62 = vector.load %arg3[%c0_17, %c0_18] : memref<8x128xf32, #tpu.memory_space<vmem>>, vector<8x128xf32>
    tpu.vector_store %arg3[%c0_17, %c0_18], %61 {strides = array<i32>} : memref<8x128xf32, #tpu.memory_space<vmem>>, vector<8x128xf32>,
    return
  }
  func.func @transform_0(%arg0: i32) -> (i32, i32) {
    %c0_i32 = arith.constant 0 : i32
    %c0_i32_0 = arith.constant 0 : i32
    return %arg0, %c0_i32 : i32, i32
  }
  func.func @transform_1(%arg0: i32) -> (i32, i32) {
    %c0_i32 = arith.constant 0 : i32
    %c0_i32_0 = arith.constant 0 : i32
    return %arg0, %c0_i32 : i32, i32
  }
  func.func @transform_2(%arg0: i32) -> (i32, i32) {
    %c0_i32 = arith.constant 0 : i32
    %c0_i32_0 = arith.constant 0 : i32
    return %arg0, %c0_i32 : i32, i32
  }
}

</mosaic_0001>

<bundles_post_ra>
// kernel: tpu_custom_call.1
= control target key start
LH: loop header
LB: loop body
LE: loop exit
PB: predicated region body
PF: predicated region fallthrough
CT: control target
= control target key end

     0   :  { %vm16_vm0 = vcmask 261120   ;;  %s156_s0 = inlined_call_operand.vmem [shape: f32[8,32], index: 0, kind: input, shape index: {}]   ;;  %s157_s1 = inlined_call_operand.vmem [shape: s32[8,1], index: 1, kind: input, shape index: {}]   ;;  %s158_s2 = inlined_call_operand.hbm [shape: f32[8,128], index: 2, kind: output, shape index: {}]  }
   0x1   :  { %v14_v0 = vld [vmem:[%s156_s0] sm:$0xff] }
   0x2   :  { %7 = vsyncpa [#allocation3], 0  ;;  %v17_v1 = vsel %vm16_vm0, %v14_v0, -inf  ;;  %v127_v2 = vmov 0   ;;  %v15_v3 = vld [vmem:[%s157_s1] sm:$0xff]  ;;  %v12_v9 = vlaneseq  ;;  %vm56_vm2 = vcmask 7168  }
   0x3   :  { %94 = vset.pattern.permute.xlu0 %v127_v2  ;;  %s128_s0 = smov [#allocation2]   ;;  %s81_s15 = sshll.u32 %s158_s2, 4  ;;  %s82_s15 = int_to_ptr.hbm [resolvable:$true] %s81_s15 }
   0x4   :  { %18 = vmax.xlane.f32.xlu0 %v17_v1  ;;  %v13_v10 = vand.u32 127, %v12_v9  ;;  %v49_v38 = vshrl.u32 %v12_v9, 7  ;;  %s79_s1 = sshll.u32 %s128_s0, 4  ;;  %s80_s1 = int_to_ptr.vmem [resolvable:$true] %s79_s1 }
   0x6   :  { %vm68_vm3 = vcmp.eq.s32.totalorder %v49_v38, 0  ;;  %vm69_vm4 = vcmp.eq.s32.totalorder %v13_v10, 0 }
   0x7   :  { %vm70_vm5 = vmand %vm68_vm3, %vm69_vm4 }
  0x18   :  { %29 = vperm.xlu0 %94, %v15_v3  }
  0x77   :  { %v19_v4 = vpop.xlane.xlu0 %18 }
  0x78   :  { %v20_v5 = vsub.f32 %v14_v0, %v19_v4 }
  0x7a   :  { %v21_v6 = vmul.f32 1.442695, %v20_v5 }
  0x7c   :  { %95 = vpow2.f32 %v21_v6 }
  0x82   :  { %v96_v7 = vpop.eup %95 }
  0x83   :  { %v23_v8 = vsel %vm16_vm0, %v96_v7, 0.0 }
  0x84   :  { %24 = vadd.xlane.f32.xlu1 %v23_v8 }
  0x8a   :  { %v30_v11 = vpop.permute.xlu0 %29 }
  0x8b   :  { %vm31_vm1 = vcmp.eq.s32.totalorder %v13_v10, %v30_v11 }
  0x8c   :  { %v32_v12 = vsel %vm31_vm1, %v20_v5, 0.0 }
  0x8d   :  { %v33_v13 = vsel %vm16_vm0, %v32_v12, 0.0 }
  0x8e   :  { %34 = vadd.xlane.f32.xlu1 %v33_v13 }
  0xf7   :  { %v25_v14 = vpop.xlane.xlu1 %24 }
  0xf8   :  { %97 = vlog2.f32 %v25_v14 }
  0xfe   :  { %v98_v15 = vpop.eup %97 }
  0xff   :  { %v27_v16 = vmul.f32 0.6931472, %v98_v15 }
 0x101   :  { %v35_v17 = vpop.xlane.xlu1 %34 }
 0x102   :  { %v36_v18 = vsub.f32 %v27_v16, %v35_v17 }
 0x104   :  { %v37_v19 = vmax.f32 %v36_v18, 0.0 }
 0x106   :  { %v38_v20 = vsub.f32 0.0, %v37_v19 }
 0x108   :  { %v39_v21 = vmul.f32 1.442695, %v38_v20 }
 0x10a   :  { %99 = vpow2.f32 %v39_v21 }
 0x110   :  { %v100_v22 = vpop.eup %99 }
 0x111   :  { %v41_v23 = vsub.f32 1.0, %v100_v22 }
 0x113   :  { %v42_v24 = vmax.f32 %v41_v23, 0.0 }
 0x115   :  { %v43_v25 = vmul.f32 %v42_v24, %v42_v24 }
 0x117   :  { %v44_v26 = vmul.f32 %v43_v25, %v43_v25 }
 0x119   :  { %v45_v27 = vmul.f32 %v44_v26, %v42_v24 }
 0x11b   :  { %v46_v28 = vmul.f32 0.5, %v45_v27 }
 0x11d   :  { %v47_v29 = vmul.f32 %v46_v28, %v37_v19 }
 0x11f   :  { %v57_v30 = vsel %vm56_vm2, %v47_v29, 0.0 }
 0x120   :  { %58 = vadd.xlane.f32.xlu2 %v57_v30 }
 0x193   :  { %v59_v31 = vpop.xlane.xlu2 %58 }
 0x194   :  { %v60_v32 = vrot.slane %v59_v31, 4 }
 0x196   :  { %v61_v33 = vadd.f32 %v60_v32, %v59_v31 }
 0x198   :  { %v62_v34 = vrot.slane %v61_v33, 2 }
 0x19a   :  { %v63_v35 = vadd.f32 %v62_v34, %v61_v33 }
 0x19c   :  { %v64_v36 = vrot.slane %v63_v35, 1 }
 0x19e   :  { %v65_v37 = vadd.f32 %v64_v36, %v63_v35 }
 0x1a0   :  { %90 = vpush %v65_v37 }
 0x1d1   :  { %s91_s16 = spop %90 }
 0x1d2   :  { %v71_v39 = vstv %s91_s16 }
 0x1d3   :  { %v72_v40 = vsel %vm70_vm5, %v71_v39, 0.0 }
 0x1d4   :  { %73 = vst [vmem:[#allocation2] sm:$0xff] %v72_v40 }
 0x1d5   :  { %84 = dma.vmem_to_hbm [thread:$0]  %s80_s1, 128, %s82_s15, [#allocation3]  }
 0x1d6   :  { %125 = dma.done.wait [#allocation3], 128  }
 0x1d7   :  { %126 = vsyncadd [#allocation3], 4294967168 }
 0x1d8   :  { %89 = vsyncpa [#allocation3], 1 }

</bundles_post_ra>
